<compile_context>
chip_gen: v6e
topology: v6e:2x2x1
jax: 0.10.0
libtpu: 0.0.40
codegen_flags: <defaults>
</compile_context>

<pallas_src>
import functools

import jax
import jax.numpy as jnp
from jax.experimental import pallas as pl
from jax.experimental.pallas import tpu as pltpu


def _round_up(x: int, m: int) -> int:
    return ((x + m - 1) // m) * m


def _nll_sum_kernel(pred_ref, wanted_ref, out_ref, *, rows_valid: int, num_sub: int):
    """Accumulates sum over valid rows of pred[row, wanted[row, g]] into out_ref."""
    c = pl.program_id(0)           # TensorCore split (size 1 or 2)
    i = pl.program_id(1)           # batch tile within the split
    bps = pl.num_programs(1)       # blocks per split

    @pl.when(i == 0)
    def _init():
        out_ref[...] = jnp.zeros_like(out_ref)

    # Native-dtype tile was DMA'd; upcast after the load (keeps HBM bytes minimal).
    pred = pred_ref[...].astype(jnp.float32)          # (tb, W) packed log-probs
    wanted = wanted_ref[...]                          # (tb, G) flat column targets
    tb = pred.shape[0]

    col_ids = jax.lax.broadcasted_iota(jnp.int32, pred.shape, 1)
    row_ids = jax.lax.broadcasted_iota(jnp.int32, pred.shape, 0)

    # Explicit row predicate: ragged last tiles (and any fully-invalid rows)
    # contribute exactly 0, independent of garbage in the partial-block DMA.
    base = (c * bps + i) * tb
    row_ok = (base + row_ids) < rows_valid

    # One compare per packed sub-row (G is small & static); OR into one mask,
    # single fused select + full XLU reduce.  All off the DMA critical path.
    hit = None
    for g in range(num_sub):
        m = col_ids == wanted[:, g:g + 1]
        hit = m if hit is None else (hit | m)
    mask = row_ok & hit

    out_ref[...] += jnp.sum(jnp.where(mask, pred, jnp.float32(0.0)))


def nll_loss_pallas(pred, target, trans_feat=None, *,
                    max_block_rows: int = 8192,
                    vmem_input_budget_bytes: int = 20 * 1024 * 1024):
    """F.nll_loss(pred, target) with reduction='mean'. trans_feat is unused."""
    del trans_feat  # unused, matching the PyTorch module

    B, C = pred.shape
    itemsize = jnp.dtype(pred.dtype).itemsize

    # --- Lane-dense packing for small class counts -------------------------
    # Pack G batch rows per 128-lane row (contiguous reshape => no HBM copy).
    max_g = max(1, min(128 // max(C, 1), 32))
    G = 1
    for g in range(max_g, 0, -1):
        if B % g == 0:
            G = g
            break
    rows = B // G          # packed row count
    W = G * C              # packed row width (<= 128 whenever G > 1)

    target_i32 = target.astype(jnp.int32).reshape(B)
    sub = jnp.arange(B, dtype=jnp.int32) % G
    wanted = (sub * C + target_i32).reshape(rows, G)   # flat column index per sample
    pred_packed = pred.reshape(rows, W)                # free contiguous collapse

    # --- Tile size: lane-padding-aware VMEM budget (double-buffered inputs) -
    lanes_pred = _round_up(W, 128)
    per_row_bytes = 2 * (lanes_pred * itemsize + 128 * 4)   # pred + int32 targets, x2 bufs
    rows_cap = max(8, (vmem_input_budget_bytes // per_row_bytes) // 8 * 8)
    tb_cap = min(max_block_rows, rows_cap)
    if rows <= tb_cap:
        tb = rows                      # single (possibly non-x8) tile == full dim: legal
    else:
        tb = max(8, (tb_cap // 8) * 8)

    total_blocks = -(-rows // tb)
    # 2-way split across TensorCores (helps v7x; harmless on 1-TC chips) only
    # when the block count divides evenly so no block index ever goes OOB.
    nsplit = 2 if (total_blocks >= 2 and total_blocks % 2 == 0) else 1
    bps = total_blocks // nsplit

    kernel = functools.partial(_nll_sum_kernel, rows_valid=rows, num_sub=G)

    partials = pl.pallas_call(
        kernel,
        out_shape=jax.ShapeDtypeStruct((nsplit, 1), jnp.float32),
        grid=(nsplit, bps),
        in_specs=[
            pl.BlockSpec((tb, W), lambda c, i, bps=bps: (c * bps + i, 0)),
            pl.BlockSpec((tb, G), lambda c, i, bps=bps: (c * bps + i, 0)),
        ],
        out_specs=pl.BlockSpec((1, 1), lambda c, i: (c, 0)),
        compiler_params=pltpu.CompilerParams(
            dimension_semantics=("parallel", "arbitrary"),
            vmem_limit_bytes=32 * 1024 * 1024),
    )(pred_packed, wanted)

    # Mean reduction with negation; tiny (nsplit,1) reduce stays in XLA.
    return -jnp.sum(partials) * (1.0 / float(B))


if __name__ == "__main__":
    key = jax.random.PRNGKey(0)
    k_logits, k_target, k_trans = jax.random.split(key, 3)

    # Small shapes consistent with the PointCNN classification head.
    B, C = 8, 16
    logits = jax.random.normal(k_logits, (B, C), dtype=jnp.float32)
    pred = jax.nn.log_softmax(logits, axis=-1)
    target = jax.random.randint(k_target, (B,), 0, C, dtype=jnp.int32)
    trans_feat = jax.random.normal(k_trans, (B, 4, 4), dtype=jnp.float32)  # unused

    loss = nll_loss_pallas(pred, target, trans_feat)
    jax.block_until_ready(loss)
    ref = -jnp.mean(pred[jnp.arange(B), target])
    assert jnp.allclose(loss, ref, atol=1e-6, rtol=1e-6), (loss, ref)

    # Extra coverage: 2-way split grid, ragged last tile, no-packing fallback.
    for (b2, c2, mbr) in ((256, 16, 8), (272, 16, 8), (37, 40, 8192)):
        kl, kt = jax.random.split(jax.random.PRNGKey(b2 * 131 + c2), 2)
        p2 = jax.nn.log_softmax(
            jax.random.normal(kl, (b2, c2), dtype=jnp.float32), axis=-1)
        t2 = jax.random.randint(kt, (b2,), 0, c2, dtype=jnp.int32)
        l2 = nll_loss_pallas(p2, t2, None, max_block_rows=mbr)
        jax.block_until_ready(l2)
        r2 = -jnp.mean(p2[jnp.arange(b2), t2])
        assert jnp.allclose(l2, r2, atol=1e-5, rtol=1e-5), (b2, c2, l2, r2)

    print("KERNEL_OK")
</pallas_src>

<mosaic_0001>
module attributes {stable_mosaic.version = 11 : i64} {
  func.func @_nll_sum_kernel(%arg0: i32, %arg1: i32, %arg2: memref<1x128xf32, #tpu.memory_space<vmem>>, %arg3: memref<1x8xi32, #tpu.memory_space<vmem>>, %arg4: memref<1x1xf32, #tpu.memory_space<vmem>>) attributes {dimension_semantics = [#tpu.dimension_semantics<parallel>, #tpu.dimension_semantics<arbitrary>], iteration_bounds = array<i64: 1, 1>, scalar_prefetch = 0 : i64, scratch_operands = 0 : i64, tpu.core_type = #tpu.core_type<tc>, window_params = [{transform_indices = @transform_0, window_bounds = array<i64: 1, 128>}, {transform_indices = @transform_1, window_bounds = array<i64: 1, 8>}, {transform_indices = @transform_2, window_bounds = array<i64: 1, 1>}]} {
    %c0_i32 = arith.constant 0 : i32
    %0 = arith.cmpi eq, %arg1, %c0_i32 : i32
    %1 = arith.extui %0 : i1 to i32
    %c0_i32_0 = arith.constant 0 : i32
    %2 = arith.cmpi ne, %1, %c0_i32_0 : i32
    scf.if %2 {
      %cst_11 = arith.constant 0.000000e+00 : f32
      %56 = vector.broadcast %cst_11 : f32 to vector<1x1xf32>
      %c0_12 = arith.constant 0 : index
      %c0_13 = arith.constant 0 : index
      %57 = vector.load %arg4[%c0_12, %c0_13] : memref<1x1xf32, #tpu.memory_space<vmem>>, vector<1x1xf32>
      tpu.vector_store %arg4[%c0_12, %c0_13], %56 {strides = array<i32>} : memref<1x1xf32, #tpu.memory_space<vmem>>, vector<1x1xf32>,
    } else {
    }
    %c0 = arith.constant 0 : index
    %c0_1 = arith.constant 0 : index
    %3 = vector.load %arg2[%c0, %c0_1] : memref<1x128xf32, #tpu.memory_space<vmem>>, vector<1x128xf32>
    %c0_2 = arith.constant 0 : index
    %c0_3 = arith.constant 0 : index
    %4 = vector.load %arg3[%c0_2, %c0_3] : memref<1x8xi32, #tpu.memory_space<vmem>>, vector<1x8xi32>
    %5 = tpu.iota {dimensions = array<i32: 1>} : vector<1x128xi32>
    %6 = tpu.iota {dimensions = array<i32: 0>} : vector<1x128xi32>
    %c1_i32 = arith.constant 1 : i32
    %7 = arith.muli %arg0, %c1_i32 : i32
    %8 = arith.addi %7, %arg1 : i32
    %c1_i32_4 = arith.constant 1 : i32
    %9 = arith.muli %8, %c1_i32_4 : i32
    %10 = vector.broadcast %9 : i32 to vector<1x128xi32>
    %11 = arith.addi %10, %6 : vector<1x128xi32>
    %c1_i32_5 = arith.constant 1 : i32
    %12 = vector.broadcast %c1_i32_5 : i32 to vector<1x128xi32>
    %13 = arith.cmpi slt, %11, %12 : vector<1x128xi32>
    %14 = vector.extract_strided_slice %4 {offsets = [0, 0], sizes = [1, 1], strides = [1, 1]} : vector<1x8xi32> to vector<1x1xi32>
    %15 = vector.broadcast %14 : vector<1x1xi32> to vector<1x128xi32>
    %16 = arith.cmpi eq, %5, %15 : vector<1x128xi32>
    %17 = vector.extract_strided_slice %4 {offsets = [0, 1], sizes = [1, 1], strides = [1, 1]} : vector<1x8xi32> to vector<1x1xi32>
    %18 = vector.broadcast %17 : vector<1x1xi32> to vector<1x128xi32>
    %19 = arith.cmpi eq, %5, %18 : vector<1x128xi32>
    %20 = arith.ori %16, %19 : vector<1x128xi1>
    %21 = vector.extract_strided_slice %4 {offsets = [0, 2], sizes = [1, 1], strides = [1, 1]} : vector<1x8xi32> to vector<1x1xi32>
    %22 = vector.broadcast %21 : vector<1x1xi32> to vector<1x128xi32>
    %23 = arith.cmpi eq, %5, %22 : vector<1x128xi32>
    %24 = arith.ori %20, %23 : vector<1x128xi1>
    %25 = vector.extract_strided_slice %4 {offsets = [0, 3], sizes = [1, 1], strides = [1, 1]} : vector<1x8xi32> to vector<1x1xi32>
    %26 = vector.broadcast %25 : vector<1x1xi32> to vector<1x128xi32>
    %27 = arith.cmpi eq, %5, %26 : vector<1x128xi32>
    %28 = arith.ori %24, %27 : vector<1x128xi1>
    %29 = vector.extract_strided_slice %4 {offsets = [0, 4], sizes = [1, 1], strides = [1, 1]} : vector<1x8xi32> to vector<1x1xi32>
    %30 = vector.broadcast %29 : vector<1x1xi32> to vector<1x128xi32>
    %31 = arith.cmpi eq, %5, %30 : vector<1x128xi32>
    %32 = arith.ori %28, %31 : vector<1x128xi1>
    %33 = vector.extract_strided_slice %4 {offsets = [0, 5], sizes = [1, 1], strides = [1, 1]} : vector<1x8xi32> to vector<1x1xi32>
    %34 = vector.broadcast %33 : vector<1x1xi32> to vector<1x128xi32>
    %35 = arith.cmpi eq, %5, %34 : vector<1x128xi32>
    %36 = arith.ori %32, %35 : vector<1x128xi1>
    %37 = vector.extract_strided_slice %4 {offsets = [0, 6], sizes = [1, 1], strides = [1, 1]} : vector<1x8xi32> to vector<1x1xi32>
    %38 = vector.broadcast %37 : vector<1x1xi32> to vector<1x128xi32>
    %39 = arith.cmpi eq, %5, %38 : vector<1x128xi32>
    %40 = arith.ori %36, %39 : vector<1x128xi1>
    %41 = vector.extract_strided_slice %4 {offsets = [0, 7], sizes = [1, 1], strides = [1, 1]} : vector<1x8xi32> to vector<1x1xi32>
    %42 = vector.broadcast %41 : vector<1x1xi32> to vector<1x128xi32>
    %43 = arith.cmpi eq, %5, %42 : vector<1x128xi32>
    %44 = arith.ori %40, %43 : vector<1x128xi1>
    %45 = arith.andi %13, %44 : vector<1x128xi1>
    %c0_6 = arith.constant 0 : index
    %c0_7 = arith.constant 0 : index
    %46 = vector.load %arg4[%c0_6, %c0_7] : memref<1x1xf32, #tpu.memory_space<vmem>>, vector<1x1xf32>
    %cst = arith.constant 0.000000e+00 : f32
    %47 = vector.broadcast %cst : f32 to vector<1x128xf32>
    %48 = arith.select %45, %3, %47 : vector<1x128xi1>, vector<1x128xf32>
    %49 = vector.shape_cast %48 : vector<1x128xf32> to vector<1x1x128xf32>
    %cst_8 = arith.constant dense<0.000000e+00> : vector<1xf32>
    %50 = vector.multi_reduction <add>, %49, %cst_8 [1, 2] : vector<1x1x128xf32> to vector<1xf32>
    %51 = vector.shape_cast %50 : vector<1xf32> to vector<1x1x1xf32>
    %52 = vector.extract %51[0, 0, 0] : f32 from vector<1x1x1xf32>
    %53 = vector.broadcast %52 : f32 to vector<1x1xf32>
    %54 = arith.addf %46, %53 : vector<1x1xf32>
    %c0_9 = arith.constant 0 : index
    %c0_10 = arith.constant 0 : index
    %55 = vector.load %arg4[%c0_9, %c0_10] : memref<1x1xf32, #tpu.memory_space<vmem>>, vector<1x1xf32>
    tpu.vector_store %arg4[%c0_9, %c0_10], %54 {strides = array<i32>} : memref<1x1xf32, #tpu.memory_space<vmem>>, vector<1x1xf32>,
    return
  }
  func.func @transform_0(%arg0: i32, %arg1: i32) -> (i32, i32) {
    %c1_i32 = arith.constant 1 : i32
    %0 = arith.muli %arg0, %c1_i32 : i32
    %1 = arith.addi %0, %arg1 : i32
    %c0_i32 = arith.constant 0 : i32
    %c0_i32_0 = arith.constant 0 : i32
    return %1, %c0_i32 : i32, i32
  }
  func.func @transform_1(%arg0: i32, %arg1: i32) -> (i32, i32) {
    %c1_i32 = arith.constant 1 : i32
    %0 = arith.muli %arg0, %c1_i32 : i32
    %1 = arith.addi %0, %arg1 : i32
    %c0_i32 = arith.constant 0 : i32
    %c0_i32_0 = arith.constant 0 : i32
    return %1, %c0_i32 : i32, i32
  }
  func.func @transform_2(%arg0: i32, %arg1: i32) -> (i32, i32) {
    %c0_i32 = arith.constant 0 : i32
    %c0_i32_0 = arith.constant 0 : i32
    return %arg0, %c0_i32 : i32, i32
  }
}

</mosaic_0001>

<bundles_post_ra>
// kernel: tpu_custom_call.1
= control target key start
LH: loop header
LB: loop body
LE: loop exit
PB: predicated region body
PF: predicated region fallthrough
CT: control target
= control target key end

     0   :  { %7 = vsyncpa [#allocation3], 0  ;;  %s268_s0 = inlined_call_operand.hbm [shape: f32[1,128], index: 0, kind: input, shape index: {}]   ;;  %s269_s1 = inlined_call_operand.vmem [shape: s32[1,8], index: 1, kind: input, shape index: {}]   ;;  %s270_s2 = inlined_call_operand.hbm [shape: f32[1,1], index: 2, kind: output, shape index: {}]  }
   0x1   :  { %8 = vsyncpa [#allocation4], 0  ;;  %s231_s9 = smov [#allocation2]  }
   0x2   :  { %s18_s10 = sshll.u32 %s231_s9, 4  ;;  %s19_s10 = int_to_ptr.vmem [resolvable:$true] %s18_s10 }
   0x3   :  { %s195_s11 = scalar_lea.vmem %s19_s10, 16  ;;  %s199_s12 = scalar_lea.vmem %s19_s10, 32 }
   0x4   :  { %p196_p0 = scmp.ne.s32.totalorder %s19_s10, %s195_s11  ;;  %p200_p1 = scmp.lt.s32.totalorder %s19_s10, %s19_s10 }
   0x5   :  { %p201_p2 = scmp.lt.s32.totalorder %s199_s12, %s195_s11 }
   0x7   :  { %p202_p3 = por %p201_p2, %p200_p1 }
   0x9   :  { %p203_p4 = pnand %p202_p3, %p196_p0 }
   0xb   :  { %206 = shalt.err (!%p203_p4)
}
   0xc   :  { %21 = dma.hbm_to_vmem [thread:$0]  %s268_s0, 16, %s19_s10, [#allocation3]  }
   0xd   :  { %227 = dma.done.wait [#allocation3], 16  }
   0xe   :  { %228 = vsyncadd [#allocation3], 4294967280  ;;  %vm271_vm0 = vcmask 0   ;;  %v232_v0 = vmov 0.0   ;;  %v233_v1 = vmov 2   ;;  %v234_v2 = vmov 0  }
   0xf   :  { %47 = vst.msk [vmem:[#allocation5] sm:$0x1] %vm271_vm0, %v232_v0  ;;  %180 = vset.pattern.permute.xlu1 %v233_v1  ;;  %178 = vset.pattern.permute.xlu0 %v234_v2  ;;  %v49_v3 = vld [vmem:[%s269_s1] sm:$0x1]  ;;  %v235_v4 = vmov 3   ;;  %v236_v5 = vmov 1   ;;  %v50_v10 = vlaneseq }
  0x10   :  { %76 = vperm.xlu1 %180, %v49_v3   ;;  %59 = vperm.xlu0 %178, %v49_v3   ;;  %v237_v6 = vmov 4   ;;  %v238_v7 = vmov 5   ;;  %v239_v8 = vmov 6   ;;  %v240_v9 = vmov 7   ;;  %v48_v30 = vld [vmem:[#allocation2] sm:$0x1] }
  0x11   :  { %v53_v11 = vshrl.u32 %v50_v10, 7  ;;  %v51_v19 = vand.u32 127, %v50_v10  ;;  %s241_s0 = smov [#allocation5]  }
  0x12   :  { %s153_s1 = sshll.u32 %s241_s0, 4  ;;  %s154_s1 = int_to_ptr.vmem [resolvable:$true] %s153_s1 }
  0x13   :  { %v63_v14 = vsub.s32 0, %v53_v11  ;;  %vm57_vm13 = vcmp.lt.s32.totalorder %v53_v11, 1  ;;  %s207_s18 = scalar_lea.vmem %s154_s1, 16  ;;  %s211_s19 = scalar_lea.vmem %s154_s1, 32 }
  0x14   :  { %181 = vset.pattern.permute.xlu1 %v235_v4  ;;  %179 = vset.pattern.permute.xlu0 %v236_v5  ;;  %p208_p5 = scmp.ne.s32.totalorder %s154_s1, %s207_s18  ;;  %p212_p6 = scmp.lt.s32.totalorder %s154_s1, %s154_s1 }
  0x15   :  { %85 = vperm.xlu1 %181, %v49_v3   ;;  %67 = vperm.xlu0 %179, %v49_v3   ;;  %p213_p7 = scmp.lt.s32.totalorder %s211_s19, %s207_s18 }
  0x16   :  { %v130_v40 = vld [vmem:[#allocation5] sm:$0x1] }
  0x17   :  { %p214_p8 = por %p213_p7, %p212_p6 }
  0x19   :  { %182 = vset.pattern.permute.xlu1 %v237_v6  ;;  %183 = vset.pattern.permute.xlu0 %v238_v7  ;;  %p215_p9 = pnand %p214_p8, %p208_p5 }
  0x1a   :  { %94 = vperm.xlu1 %182, %v49_v3   ;;  %103 = vperm.xlu0 %183, %v49_v3  }
  0x1e   :  { %184 = vset.pattern.permute.xlu1 %v239_v8  ;;  %186 = vset.pattern.permute.xlu0 %v240_v9 }
  0x1f   :  { %112 = vperm.xlu1 %184, %v49_v3  }
  0x23   :  { %185 = vset.pattern.permute.xlu1 %v240_v9 }
  0x24   :  { %121 = vperm.xlu1 %185, %v49_v3  }
  0x8b   :  { %v77_v12 = vpop.permute.xlu1 %76  ;;  %v60_v13 = vpop.permute.xlu0 %59 }
  0x8c   :  { %v64_v15 = vrot.slane %v60_v13, %v63_v14  ;;  %v81_v20 = vrot.slane %v77_v12, %v63_v14 }
  0x8e   :  { %vm65_vm1 = vcmp.eq.s32.totalorder %v51_v19, %v64_v15  ;;  %vm82_vm4 = vcmp.eq.s32.totalorder %v51_v19, %v81_v20 }
  0x90   :  { %v86_v16 = vpop.permute.xlu1 %85  ;;  %v68_v17 = vpop.permute.xlu0 %67 }
  0x91   :  { %v72_v18 = vrot.slane %v68_v17, %v63_v14  ;;  %v90_v24 = vrot.slane %v86_v16, %v63_v14 }
  0x93   :  { %vm73_vm2 = vcmp.eq.s32.totalorder %v51_v19, %v72_v18  ;;  %vm91_vm7 = vcmp.eq.s32.totalorder %v51_v19, %v90_v24 }
  0x94   :  { %vm74_vm3 = vmor %vm65_vm1, %vm73_vm2  ;;  %vm132_vm2 = vcmask 1040384  }
  0x95   :  { %v95_v21 = vpop.permute.xlu1 %94  ;;  %v104_v23 = vpop.permute.xlu0 %103  ;;  %vm83_vm5 = vmor %vm74_vm3, %vm82_vm4  ;;  %vm272_vm3 = vcmask 0  }
  0x96   :  { %v99_v22 = vrot.slane %v95_v21, %v63_v14  ;;  %v108_v25 = vrot.slane %v104_v23, %v63_v14  ;;  %vm92_vm8 = vmor %vm83_vm5, %vm91_vm7 }
  0x98   :  { %vm100_vm6 = vcmp.eq.s32.totalorder %v51_v19, %v99_v22  ;;  %vm109_vm10 = vcmp.eq.s32.totalorder %v51_v19, %v108_v25 }
  0x99   :  { %vm101_vm9 = vmor %vm92_vm8, %vm100_vm6 }
  0x9a   :  { %v113_v26 = vpop.permute.xlu1 %112  ;;  %vm110_vm12 = vmor %vm101_vm9, %vm109_vm10 }
  0x9b   :  { %v117_v27 = vrot.slane %v113_v26, %v63_v14 }
  0x9d   :  { %vm118_vm11 = vcmp.eq.s32.totalorder %v51_v19, %v117_v27 }
  0x9e   :  { %vm119_vm14 = vmor %vm110_vm12, %vm118_vm11 }
  0x9f   :  { %v122_v28 = vpop.permute.xlu1 %121 }
  0xa0   :  { %v126_v29 = vrot.slane %v122_v28, %v63_v14 }
  0xa2   :  { %vm127_vm15 = vcmp.eq.s32.totalorder %v51_v19, %v126_v29 }
  0xa3   :  { %vm128_vm1 = vmor %vm119_vm14, %vm127_vm15 }
  0xa4   :  { %vm129_vm0 = vmand %vm57_vm13, %vm128_vm1 }
  0xa5   :  { %v131_v31 = vsel %vm129_vm0, %v48_v30, 0.0 }
  0xa6   :  { %v133_v32 = vsel %vm132_vm2, %v131_v31, 0.0 }
  0xa7   :  { %134 = vadd.xlane.f32.xlu0 %v133_v32 }
 0x130   :  { %v135_v33 = vpop.xlane.xlu0 %134 }
 0x131   :  { %v136_v34 = vrot.slane %v135_v33, 4 }
 0x133   :  { %v137_v35 = vadd.f32 %v136_v34, %v135_v33 }
 0x135   :  { %v138_v36 = vrot.slane %v137_v35, 2 }
 0x137   :  { %v139_v37 = vadd.f32 %v138_v36, %v137_v35 }
 0x139   :  { %v140_v38 = vrot.slane %v139_v37, 1 }
 0x13b   :  { %v141_v39 = vadd.f32 %v140_v38, %v139_v37 }
 0x13d   :  { %165 = vpush %v141_v39 }
 0x16e   :  { %s166_s17 = spop %165 }
 0x16f   :  { %v143_v41 = vstv %s166_s17 }
 0x170   :  { %v144_v42 = vadd.f32 %v143_v41, %v130_v40 }
 0x172   :  { %146 = vst.msk [vmem:[#allocation5] sm:$0x1] %vm272_vm3, %v144_v42 }
 0x173   :  { %218 = shalt.err (!%p215_p9)
}
 0x174   :  { %156 = dma.vmem_to_hbm [thread:$0]  %s154_s1, 16, %s270_s2, [#allocation4]  }
 0x175   :  { %229 = dma.done.wait [#allocation4], 16  }
 0x176   :  { %230 = vsyncadd [#allocation4], 4294967280 }
 0x177   :  { %160 = vsyncpa [#allocation3], 1 }
 0x178   :  { %161 = vsyncpa [#allocation4], 1 }

</bundles_post_ra>
